<compile_context>
chip_gen: v7x
topology: tpu7x:2x2x1
jax: 0.10.0
libtpu: 0.0.40
codegen_flags: <defaults>
</compile_context>

<pallas_src>
import functools

import jax
import jax.numpy as jnp
import numpy as np
from jax.experimental import pallas as pl
from jax.experimental.pallas import tpu as pltpu


def _layer_channel_dims(depth, channels):
    """(in, out) channel chain of the torch convmodel: 1 -> C -> ... -> C -> 1."""
    return [1] + [channels] * (depth - 1) + [1]


def _fused_convmodel_kernel(w_ref, b_ref, x_ref, o_ref, *, ksize, depth,
                            channels, length, w_offsets, b_offsets):
    """Runs every convmodel layer back-to-back using only VPU/XLU/EUP.

    w_ref : (sum_l cout_l*cin_l*K,) f32 SMEM   raw (unsymmetrized) weights
    b_ref : (sum_l cout_l,)         f32 SMEM   biases
    x_ref : (block_b, L)            f32 VMEM   input block  (layer-0 Cin == 1)
    o_ref : (block_b, L)            f32 VMEM   output block (last Cout == 1)

    out[b, co, t] = bias[co] + sum_{ci,k} w_eff[co,ci,k] * x[b, ci, (t+k-pad) mod L]
    with w_eff = 0.5 * (w + flip_k(w))   (FlipSymmetric parametrization).
    """
    K = ksize
    pad = (K - 1) // 2          # center tap index (K is odd)
    n_pairs = K // 2            # symmetric tap pairs (p, K-1-p), p < pad
    dims = _layer_channel_dims(depth, channels)
    tb = x_ref.shape[0]         # batch rows in this block

    # Packed activation slab: (cin * tb, L), channel-major rows
    # (rows [ci*tb, (ci+1)*tb) hold channel ci for every batch row).
    h = x_ref[...].astype(jnp.float32)          # layer 0: cin == 1 -> (tb, L)

    for layer in range(depth):
        cin, cout = dims[layer], dims[layer + 1]
        wbase = w_offsets[layer]
        bbase = b_offsets[layer]

        def w_raw(co, ci, k, _base=wbase, _cin=cin):
            return w_ref[_base + (co * _cin + ci) * K + k]

        # Circular taps as lane rotations on the whole packed slab (XLU).
        # Because w_eff[p] == w_eff[K-1-p], the two rotations of a pair are
        # summed once here and reused by every output channel.  The center
        # tap (shift == 0) is simply `h` and is never materialized.
        sym = []
        for p in range(n_pairs):
            s_lo = (pad - p) % length
            s_hi = (pad - (K - 1 - p)) % length
            lo = h if s_lo == 0 else pltpu.roll(h, shift=s_lo, axis=1)
            hi = h if s_hi == 0 else pltpu.roll(h, shift=s_hi, axis=1)
            sym.append(lo + hi)

        accs = []
        for co in range(cout):
            # Bias folded into the accumulator init (SMEM scalar splat).
            acc = jnp.full((tb, length), b_ref[bbase + co], dtype=jnp.float32)
            for ci in range(cin):
                row0 = ci * tb
                h_ci = h[row0:row0 + tb, :]
                # Center tap: w_eff[pad] = 0.5*(w[pad]+w[pad]) = w[pad].
                acc = acc + w_raw(co, ci, pad) * h_ci
                for p in range(n_pairs):
                    w_eff = 0.5 * (w_raw(co, ci, p) + w_raw(co, ci, K - 1 - p))
                    acc = acc + w_eff * sym[p][row0:row0 + tb, :]
            accs.append(acc)

        # Repack for the next layer; one tanh per layer on the full packed
        # slab keeps the single EUP slot fed with dense vregs.
        h = accs[0] if cout == 1 else jnp.concatenate(accs, axis=0)
        if layer != depth - 1:
            h = jnp.tanh(h)      # EUP

    o_ref[...] = h.astype(o_ref.dtype)


def _convmodel_forward_impl(x, params):
    """Fused forward. x: (B, 1, L) f32; params: list of (w, b) per layer."""
    B, cin0, L = x.shape
    assert cin0 == 1, "convmodel expects a single input channel"
    depth = len(params)
    K = int(params[0][0].shape[-1])
    assert K % 2 == 1, "circular padding=(K-1)//2 + flip pairing requires odd K"
    channels = int(params[0][0].shape[0]) if depth > 1 else 1
    dims = _layer_channel_dims(depth, channels)

    # Flatten all raw weights / biases (layer-major) into two SMEM scalar
    # arrays; offsets are static Python ints baked into the kernel.
    w_parts, b_parts, w_offsets, b_offsets = [], [], [], []
    woff = boff = 0
    for layer, (w, b) in enumerate(params):
        assert w.shape == (dims[layer + 1], dims[layer], K)
        assert b.shape == (dims[layer + 1],)
        w_offsets.append(woff)
        b_offsets.append(boff)
        w_parts.append(w.reshape(-1).astype(jnp.float32))
        b_parts.append(b.reshape(-1).astype(jnp.float32))
        woff += w.size
        boff += b.size
    w_flat = jnp.concatenate(w_parts)
    b_flat = jnp.concatenate(b_parts)

    # Batch block: keep channels*block_b around one full f32 vreg at toy sizes
    # and well under the 64-vreg file when scaling (see header note).
    block_b = min(B, 8)
    grid = (pl.cdiv(B, block_b),)

    kernel = functools.partial(
        _fused_convmodel_kernel,
        ksize=K, depth=depth, channels=channels, length=L,
        w_offsets=tuple(w_offsets), b_offsets=tuple(b_offsets))

    out2d = pl.pallas_call(
        kernel,
        out_shape=jax.ShapeDtypeStruct((B, L), jnp.float32),
        grid=grid,
        in_specs=[
            pl.BlockSpec(memory_space=pltpu.MemorySpace.SMEM),   # weights
            pl.BlockSpec(memory_space=pltpu.MemorySpace.SMEM),   # biases
            pl.BlockSpec((block_b, L), lambda i: (i, 0)),        # activations
        ],
        out_specs=pl.BlockSpec((block_b, L), lambda i: (i, 0)),
        compiler_params=pltpu.CompilerParams(
            dimension_semantics=("parallel",)),
    )(w_flat, b_flat, x.reshape(B, L))
    return out2d.reshape(B, 1, L)


convmodel_forward = jax.jit(_convmodel_forward_impl)


def init_convmodel_params(key, kernel_size, depth, channels):
    """Deterministic parameter init matching the torch module's shapes."""
    dims = _layer_channel_dims(depth, channels)
    params = []
    for kk in range(depth):
        in_ch, out_ch = dims[kk], dims[kk + 1]
        key, kw, kb = jax.random.split(key, 3)
        bound = 1.0 / np.sqrt(in_ch * kernel_size)
        w = jax.random.uniform(
            kw, (out_ch, in_ch, kernel_size), jnp.float32, -bound, bound)
        b = jax.random.uniform(kb, (out_ch,), jnp.float32, -bound, bound)
        params.append((w, b))
    return params


def _reference_forward(x, params):
    """Independent pure-JAX reference: explicit circular pad + lax conv."""
    depth = len(params)
    h = x
    for kk, (w, b) in enumerate(params):
        w_eff = 0.5 * (w + w[..., ::-1])            # FlipSymmetric
        K = w.shape[-1]
        pad = (K - 1) // 2
        hp = jnp.pad(h, ((0, 0), (0, 0), (pad, pad)), mode="wrap")
        h = jax.lax.conv_general_dilated(
            hp, w_eff, window_strides=(1,), padding="VALID",
            dimension_numbers=("NCH", "OIH", "NCH"),
            precision=jax.lax.Precision.HIGHEST)
        h = h + b.reshape(1, -1, 1)
        if kk != depth - 1:
            h = jnp.tanh(h)
    return h


if __name__ == "__main__":
    kernel_size = 3
    depth = 3
    channels = 4
    B, L = 2, 128

    key = jax.random.PRNGKey(0)
    key, kx = jax.random.split(key)
    x = jax.random.normal(kx, (B, 1, L), dtype=jnp.float32)
    params = init_convmodel_params(key, kernel_size, depth, channels)

    out = jax.block_until_ready(convmodel_forward(x, params))

    ref = _reference_forward(x, params)
    assert out.shape == (B, 1, L)
    np.testing.assert_allclose(np.asarray(out), np.asarray(ref),
                               rtol=1e-4, atol=1e-4)

    print("KERNEL_OK")
</pallas_src>

<mosaic_0001>
module attributes {stable_mosaic.version = 11 : i64} {
  func.func @_fused_convmodel_kernel(%arg0: i32, %arg1: memref<72xf32, #tpu.memory_space<smem>>, %arg2: memref<9xf32, #tpu.memory_space<smem>>, %arg3: memref<2x128xf32, #tpu.memory_space<vmem>>, %arg4: memref<2x128xf32, #tpu.memory_space<vmem>>) attributes {dimension_semantics = [#tpu.dimension_semantics<parallel>], iteration_bounds = array<i64: 1>, scalar_prefetch = 0 : i64, scratch_operands = 0 : i64, tpu.core_type = #tpu.core_type<tc>, window_params = [{transform_indices = @transform_0, window_bounds = array<i64: 72>}, {transform_indices = @transform_1, window_bounds = array<i64: 9>}, {transform_indices = @transform_2, window_bounds = array<i64: 2, 128>}, {transform_indices = @transform_3, window_bounds = array<i64: 2, 128>}]} {
    %c0 = arith.constant 0 : index
    %c0_0 = arith.constant 0 : index
    %0 = vector.load %arg3[%c0, %c0_0] : memref<2x128xf32, #tpu.memory_space<vmem>>, vector<2x128xf32>
    %c1_i32 = arith.constant 1 : i32
    %1 = tpu.dynamic_rotate %0 by %c1_i32 dim 1 : vector<2x128xf32>, i32 -> vector<2x128xf32>
    %c127_i32 = arith.constant 127 : i32
    %2 = tpu.dynamic_rotate %0 by %c127_i32 dim 1 : vector<2x128xf32>, i32 -> vector<2x128xf32>
    %3 = arith.addf %1, %2 : vector<2x128xf32>
    %c0_1 = arith.constant 0 : index
    %4 = memref.load %arg2[%c0_1] : memref<9xf32, #tpu.memory_space<smem>>
    %5 = vector.broadcast %4 : f32 to vector<2x128xf32>
    %c1 = arith.constant 1 : index
    %6 = memref.load %arg1[%c1] : memref<72xf32, #tpu.memory_space<smem>>
    %7 = vector.broadcast %6 : f32 to vector<2x128xf32>
    %8 = arith.mulf %7, %0 : vector<2x128xf32>
    %9 = arith.addf %5, %8 : vector<2x128xf32>
    %c0_2 = arith.constant 0 : index
    %10 = memref.load %arg1[%c0_2] : memref<72xf32, #tpu.memory_space<smem>>
    %c2 = arith.constant 2 : index
    %11 = memref.load %arg1[%c2] : memref<72xf32, #tpu.memory_space<smem>>
    %12 = arith.addf %10, %11 : f32
    %cst = arith.constant 5.000000e-01 : f32
    %13 = arith.mulf %cst, %12 : f32
    %14 = vector.broadcast %13 : f32 to vector<2x128xf32>
    %15 = arith.mulf %14, %3 : vector<2x128xf32>
    %16 = arith.addf %9, %15 : vector<2x128xf32>
    %c1_3 = arith.constant 1 : index
    %17 = memref.load %arg2[%c1_3] : memref<9xf32, #tpu.memory_space<smem>>
    %18 = vector.broadcast %17 : f32 to vector<2x128xf32>
    %c4 = arith.constant 4 : index
    %19 = memref.load %arg1[%c4] : memref<72xf32, #tpu.memory_space<smem>>
    %20 = vector.broadcast %19 : f32 to vector<2x128xf32>
    %21 = arith.mulf %20, %0 : vector<2x128xf32>
    %22 = arith.addf %18, %21 : vector<2x128xf32>
    %c3 = arith.constant 3 : index
    %23 = memref.load %arg1[%c3] : memref<72xf32, #tpu.memory_space<smem>>
    %c5 = arith.constant 5 : index
    %24 = memref.load %arg1[%c5] : memref<72xf32, #tpu.memory_space<smem>>
    %25 = arith.addf %23, %24 : f32
    %cst_4 = arith.constant 5.000000e-01 : f32
    %26 = arith.mulf %cst_4, %25 : f32
    %27 = vector.broadcast %26 : f32 to vector<2x128xf32>
    %28 = arith.mulf %27, %3 : vector<2x128xf32>
    %29 = arith.addf %22, %28 : vector<2x128xf32>
    %c2_5 = arith.constant 2 : index
    %30 = memref.load %arg2[%c2_5] : memref<9xf32, #tpu.memory_space<smem>>
    %31 = vector.broadcast %30 : f32 to vector<2x128xf32>
    %c7 = arith.constant 7 : index
    %32 = memref.load %arg1[%c7] : memref<72xf32, #tpu.memory_space<smem>>
    %33 = vector.broadcast %32 : f32 to vector<2x128xf32>
    %34 = arith.mulf %33, %0 : vector<2x128xf32>
    %35 = arith.addf %31, %34 : vector<2x128xf32>
    %c6 = arith.constant 6 : index
    %36 = memref.load %arg1[%c6] : memref<72xf32, #tpu.memory_space<smem>>
    %c8 = arith.constant 8 : index
    %37 = memref.load %arg1[%c8] : memref<72xf32, #tpu.memory_space<smem>>
    %38 = arith.addf %36, %37 : f32
    %cst_6 = arith.constant 5.000000e-01 : f32
    %39 = arith.mulf %cst_6, %38 : f32
    %40 = vector.broadcast %39 : f32 to vector<2x128xf32>
    %41 = arith.mulf %40, %3 : vector<2x128xf32>
    %42 = arith.addf %35, %41 : vector<2x128xf32>
    %c3_7 = arith.constant 3 : index
    %43 = memref.load %arg2[%c3_7] : memref<9xf32, #tpu.memory_space<smem>>
    %44 = vector.broadcast %43 : f32 to vector<2x128xf32>
    %c10 = arith.constant 10 : index
    %45 = memref.load %arg1[%c10] : memref<72xf32, #tpu.memory_space<smem>>
    %46 = vector.broadcast %45 : f32 to vector<2x128xf32>
    %47 = arith.mulf %46, %0 : vector<2x128xf32>
    %48 = arith.addf %44, %47 : vector<2x128xf32>
    %c9 = arith.constant 9 : index
    %49 = memref.load %arg1[%c9] : memref<72xf32, #tpu.memory_space<smem>>
    %c11 = arith.constant 11 : index
    %50 = memref.load %arg1[%c11] : memref<72xf32, #tpu.memory_space<smem>>
    %51 = arith.addf %49, %50 : f32
    %cst_8 = arith.constant 5.000000e-01 : f32
    %52 = arith.mulf %cst_8, %51 : f32
    %53 = vector.broadcast %52 : f32 to vector<2x128xf32>
    %54 = arith.mulf %53, %3 : vector<2x128xf32>
    %55 = arith.addf %48, %54 : vector<2x128xf32>
    %56 = tpu.concatenate %16, %29, %42, %55 in 0 : vector<2x128xf32>, vector<2x128xf32>, vector<2x128xf32>, vector<2x128xf32> -> vector<8x128xf32>
    %57 = math.tanh %56 : vector<8x128xf32>
    %c1_i32_9 = arith.constant 1 : i32
    %58 = tpu.dynamic_rotate %57 by %c1_i32_9 dim 1 : vector<8x128xf32>, i32 -> vector<8x128xf32>
    %c127_i32_10 = arith.constant 127 : i32
    %59 = tpu.dynamic_rotate %57 by %c127_i32_10 dim 1 : vector<8x128xf32>, i32 -> vector<8x128xf32>
    %60 = arith.addf %58, %59 : vector<8x128xf32>
    %c4_11 = arith.constant 4 : index
    %61 = memref.load %arg2[%c4_11] : memref<9xf32, #tpu.memory_space<smem>>
    %62 = vector.broadcast %61 : f32 to vector<2x128xf32>
    %63 = vector.extract_strided_slice %57 {offsets = [0, 0], sizes = [2, 128], strides = [1, 1]} : vector<8x128xf32> to vector<2x128xf32>
    %c13 = arith.constant 13 : index
    %64 = memref.load %arg1[%c13] : memref<72xf32, #tpu.memory_space<smem>>
    %65 = vector.broadcast %64 : f32 to vector<2x128xf32>
    %66 = arith.mulf %65, %63 : vector<2x128xf32>
    %67 = arith.addf %62, %66 : vector<2x128xf32>
    %c12 = arith.constant 12 : index
    %68 = memref.load %arg1[%c12] : memref<72xf32, #tpu.memory_space<smem>>
    %c14 = arith.constant 14 : index
    %69 = memref.load %arg1[%c14] : memref<72xf32, #tpu.memory_space<smem>>
    %70 = arith.addf %68, %69 : f32
    %cst_12 = arith.constant 5.000000e-01 : f32
    %71 = arith.mulf %cst_12, %70 : f32
    %72 = vector.extract_strided_slice %60 {offsets = [0, 0], sizes = [2, 128], strides = [1, 1]} : vector<8x128xf32> to vector<2x128xf32>
    %73 = vector.broadcast %71 : f32 to vector<2x128xf32>
    %74 = arith.mulf %73, %72 : vector<2x128xf32>
    %75 = arith.addf %67, %74 : vector<2x128xf32>
    %76 = vector.extract_strided_slice %57 {offsets = [2, 0], sizes = [2, 128], strides = [1, 1]} : vector<8x128xf32> to vector<2x128xf32>
    %c16 = arith.constant 16 : index
    %77 = memref.load %arg1[%c16] : memref<72xf32, #tpu.memory_space<smem>>
    %78 = vector.broadcast %77 : f32 to vector<2x128xf32>
    %79 = arith.mulf %78, %76 : vector<2x128xf32>
    %80 = arith.addf %75, %79 : vector<2x128xf32>
    %c15 = arith.constant 15 : index
    %81 = memref.load %arg1[%c15] : memref<72xf32, #tpu.memory_space<smem>>
    %c17 = arith.constant 17 : index
    %82 = memref.load %arg1[%c17] : memref<72xf32, #tpu.memory_space<smem>>
    %83 = arith.addf %81, %82 : f32
    %cst_13 = arith.constant 5.000000e-01 : f32
    %84 = arith.mulf %cst_13, %83 : f32
    %85 = vector.extract_strided_slice %60 {offsets = [2, 0], sizes = [2, 128], strides = [1, 1]} : vector<8x128xf32> to vector<2x128xf32>
    %86 = vector.broadcast %84 : f32 to vector<2x128xf32>
    %87 = arith.mulf %86, %85 : vector<2x128xf32>
    %88 = arith.addf %80, %87 : vector<2x128xf32>
    %89 = vector.extract_strided_slice %57 {offsets = [4, 0], sizes = [2, 128], strides = [1, 1]} : vector<8x128xf32> to vector<2x128xf32>
    %c19 = arith.constant 19 : index
    %90 = memref.load %arg1[%c19] : memref<72xf32, #tpu.memory_space<smem>>
    %91 = vector.broadcast %90 : f32 to vector<2x128xf32>
    %92 = arith.mulf %91, %89 : vector<2x128xf32>
    %93 = arith.addf %88, %92 : vector<2x128xf32>
    %c18 = arith.constant 18 : index
    %94 = memref.load %arg1[%c18] : memref<72xf32, #tpu.memory_space<smem>>
    %c20 = arith.constant 20 : index
    %95 = memref.load %arg1[%c20] : memref<72xf32, #tpu.memory_space<smem>>
    %96 = arith.addf %94, %95 : f32
    %cst_14 = arith.constant 5.000000e-01 : f32
    %97 = arith.mulf %cst_14, %96 : f32
    %98 = vector.extract_strided_slice %60 {offsets = [4, 0], sizes = [2, 128], strides = [1, 1]} : vector<8x128xf32> to vector<2x128xf32>
    %99 = vector.broadcast %97 : f32 to vector<2x128xf32>
    %100 = arith.mulf %99, %98 : vector<2x128xf32>
    %101 = arith.addf %93, %100 : vector<2x128xf32>
    %102 = vector.extract_strided_slice %57 {offsets = [6, 0], sizes = [2, 128], strides = [1, 1]} : vector<8x128xf32> to vector<2x128xf32>
    %c22 = arith.constant 22 : index
    %103 = memref.load %arg1[%c22] : memref<72xf32, #tpu.memory_space<smem>>
    %104 = vector.broadcast %103 : f32 to vector<2x128xf32>
    %105 = arith.mulf %104, %102 : vector<2x128xf32>
    %106 = arith.addf %101, %105 : vector<2x128xf32>
    %c21 = arith.constant 21 : index
    %107 = memref.load %arg1[%c21] : memref<72xf32, #tpu.memory_space<smem>>
    %c23 = arith.constant 23 : index
    %108 = memref.load %arg1[%c23] : memref<72xf32, #tpu.memory_space<smem>>
    %109 = arith.addf %107, %108 : f32
    %cst_15 = arith.constant 5.000000e-01 : f32
    %110 = arith.mulf %cst_15, %109 : f32
    %111 = vector.extract_strided_slice %60 {offsets = [6, 0], sizes = [2, 128], strides = [1, 1]} : vector<8x128xf32> to vector<2x128xf32>
    %112 = vector.broadcast %110 : f32 to vector<2x128xf32>
    %113 = arith.mulf %112, %111 : vector<2x128xf32>
    %114 = arith.addf %106, %113 : vector<2x128xf32>
    %c5_16 = arith.constant 5 : index
    %115 = memref.load %arg2[%c5_16] : memref<9xf32, #tpu.memory_space<smem>>
    %116 = vector.broadcast %115 : f32 to vector<2x128xf32>
    %117 = vector.extract_strided_slice %57 {offsets = [0, 0], sizes = [2, 128], strides = [1, 1]} : vector<8x128xf32> to vector<2x128xf32>
    %c25 = arith.constant 25 : index
    %118 = memref.load %arg1[%c25] : memref<72xf32, #tpu.memory_space<smem>>
    %119 = vector.broadcast %118 : f32 to vector<2x128xf32>
    %120 = arith.mulf %119, %117 : vector<2x128xf32>
    %121 = arith.addf %116, %120 : vector<2x128xf32>
    %c24 = arith.constant 24 : index
    %122 = memref.load %arg1[%c24] : memref<72xf32, #tpu.memory_space<smem>>
    %c26 = arith.constant 26 : index
    %123 = memref.load %arg1[%c26] : memref<72xf32, #tpu.memory_space<smem>>
    %124 = arith.addf %122, %123 : f32
    %cst_17 = arith.constant 5.000000e-01 : f32
    %125 = arith.mulf %cst_17, %124 : f32
    %126 = vector.extract_strided_slice %60 {offsets = [0, 0], sizes = [2, 128], strides = [1, 1]} : vector<8x128xf32> to vector<2x128xf32>
    %127 = vector.broadcast %125 : f32 to vector<2x128xf32>
    %128 = arith.mulf %127, %126 : vector<2x128xf32>
    %129 = arith.addf %121, %128 : vector<2x128xf32>
    %130 = vector.extract_strided_slice %57 {offsets = [2, 0], sizes = [2, 128], strides = [1, 1]} : vector<8x128xf32> to vector<2x128xf32>
    %c28 = arith.constant 28 : index
    %131 = memref.load %arg1[%c28] : memref<72xf32, #tpu.memory_space<smem>>
    %132 = vector.broadcast %131 : f32 to vector<2x128xf32>
    %133 = arith.mulf %132, %130 : vector<2x128xf32>
    %134 = arith.addf %129, %133 : vector<2x128xf32>
    %c27 = arith.constant 27 : index
    %135 = memref.load %arg1[%c27] : memref<72xf32, #tpu.memory_space<smem>>
    %c29 = arith.constant 29 : index
    %136 = memref.load %arg1[%c29] : memref<72xf32, #tpu.memory_space<smem>>
    %137 = arith.addf %135, %136 : f32
    %cst_18 = arith.constant 5.000000e-01 : f32
    %138 = arith.mulf %cst_18, %137 : f32
    %139 = vector.extract_strided_slice %60 {offsets = [2, 0], sizes = [2, 128], strides = [1, 1]} : vector<8x128xf32> to vector<2x128xf32>
    %140 = vector.broadcast %138 : f32 to vector<2x128xf32>
    %141 = arith.mulf %140, %139 : vector<2x128xf32>
    %142 = arith.addf %134, %141 : vector<2x128xf32>
    %143 = vector.extract_strided_slice %57 {offsets = [4, 0], sizes = [2, 128], strides = [1, 1]} : vector<8x128xf32> to vector<2x128xf32>
    %c31 = arith.constant 31 : index
    %144 = memref.load %arg1[%c31] : memref<72xf32, #tpu.memory_space<smem>>
    %145 = vector.broadcast %144 : f32 to vector<2x128xf32>
    %146 = arith.mulf %145, %143 : vector<2x128xf32>
    %147 = arith.addf %142, %146 : vector<2x128xf32>
    %c30 = arith.constant 30 : index
    %148 = memref.load %arg1[%c30] : memref<72xf32, #tpu.memory_space<smem>>
    %c32 = arith.constant 32 : index
    %149 = memref.load %arg1[%c32] : memref<72xf32, #tpu.memory_space<smem>>
    %150 = arith.addf %148, %149 : f32
    %cst_19 = arith.constant 5.000000e-01 : f32
    %151 = arith.mulf %cst_19, %150 : f32
    %152 = vector.extract_strided_slice %60 {offsets = [4, 0], sizes = [2, 128], strides = [1, 1]} : vector<8x128xf32> to vector<2x128xf32>
    %153 = vector.broadcast %151 : f32 to vector<2x128xf32>
    %154 = arith.mulf %153, %152 : vector<2x128xf32>
    %155 = arith.addf %147, %154 : vector<2x128xf32>
    %156 = vector.extract_strided_slice %57 {offsets = [6, 0], sizes = [2, 128], strides = [1, 1]} : vector<8x128xf32> to vector<2x128xf32>
    %c34 = arith.constant 34 : index
    %157 = memref.load %arg1[%c34] : memref<72xf32, #tpu.memory_space<smem>>
    %158 = vector.broadcast %157 : f32 to vector<2x128xf32>
    %159 = arith.mulf %158, %156 : vector<2x128xf32>
    %160 = arith.addf %155, %159 : vector<2x128xf32>
    %c33 = arith.constant 33 : index
    %161 = memref.load %arg1[%c33] : memref<72xf32, #tpu.memory_space<smem>>
    %c35 = arith.constant 35 : index
    %162 = memref.load %arg1[%c35] : memref<72xf32, #tpu.memory_space<smem>>
    %163 = arith.addf %161, %162 : f32
    %cst_20 = arith.constant 5.000000e-01 : f32
    %164 = arith.mulf %cst_20, %163 : f32
    %165 = vector.extract_strided_slice %60 {offsets = [6, 0], sizes = [2, 128], strides = [1, 1]} : vector<8x128xf32> to vector<2x128xf32>
    %166 = vector.broadcast %164 : f32 to vector<2x128xf32>
    %167 = arith.mulf %166, %165 : vector<2x128xf32>
    %168 = arith.addf %160, %167 : vector<2x128xf32>
    %c6_21 = arith.constant 6 : index
    %169 = memref.load %arg2[%c6_21] : memref<9xf32, #tpu.memory_space<smem>>
    %170 = vector.broadcast %169 : f32 to vector<2x128xf32>
    %171 = vector.extract_strided_slice %57 {offsets = [0, 0], sizes = [2, 128], strides = [1, 1]} : vector<8x128xf32> to vector<2x128xf32>
    %c37 = arith.constant 37 : index
    %172 = memref.load %arg1[%c37] : memref<72xf32, #tpu.memory_space<smem>>
    %173 = vector.broadcast %172 : f32 to vector<2x128xf32>
    %174 = arith.mulf %173, %171 : vector<2x128xf32>
    %175 = arith.addf %170, %174 : vector<2x128xf32>
    %c36 = arith.constant 36 : index
    %176 = memref.load %arg1[%c36] : memref<72xf32, #tpu.memory_space<smem>>
    %c38 = arith.constant 38 : index
    %177 = memref.load %arg1[%c38] : memref<72xf32, #tpu.memory_space<smem>>
    %178 = arith.addf %176, %177 : f32
    %cst_22 = arith.constant 5.000000e-01 : f32
    %179 = arith.mulf %cst_22, %178 : f32
    %180 = vector.extract_strided_slice %60 {offsets = [0, 0], sizes = [2, 128], strides = [1, 1]} : vector<8x128xf32> to vector<2x128xf32>
    %181 = vector.broadcast %179 : f32 to vector<2x128xf32>
    %182 = arith.mulf %181, %180 : vector<2x128xf32>
    %183 = arith.addf %175, %182 : vector<2x128xf32>
    %184 = vector.extract_strided_slice %57 {offsets = [2, 0], sizes = [2, 128], strides = [1, 1]} : vector<8x128xf32> to vector<2x128xf32>
    %c40 = arith.constant 40 : index
    %185 = memref.load %arg1[%c40] : memref<72xf32, #tpu.memory_space<smem>>
    %186 = vector.broadcast %185 : f32 to vector<2x128xf32>
    %187 = arith.mulf %186, %184 : vector<2x128xf32>
    %188 = arith.addf %183, %187 : vector<2x128xf32>
    %c39 = arith.constant 39 : index
    %189 = memref.load %arg1[%c39] : memref<72xf32, #tpu.memory_space<smem>>
    %c41 = arith.constant 41 : index
    %190 = memref.load %arg1[%c41] : memref<72xf32, #tpu.memory_space<smem>>
    %191 = arith.addf %189, %190 : f32
    %cst_23 = arith.constant 5.000000e-01 : f32
    %192 = arith.mulf %cst_23, %191 : f32
    %193 = vector.extract_strided_slice %60 {offsets = [2, 0], sizes = [2, 128], strides = [1, 1]} : vector<8x128xf32> to vector<2x128xf32>
    %194 = vector.broadcast %192 : f32 to vector<2x128xf32>
    %195 = arith.mulf %194, %193 : vector<2x128xf32>
    %196 = arith.addf %188, %195 : vector<2x128xf32>
    %197 = vector.extract_strided_slice %57 {offsets = [4, 0], sizes = [2, 128], strides = [1, 1]} : vector<8x128xf32> to vector<2x128xf32>
    %c43 = arith.constant 43 : index
    %198 = memref.load %arg1[%c43] : memref<72xf32, #tpu.memory_space<smem>>
    %199 = vector.broadcast %198 : f32 to vector<2x128xf32>
    %200 = arith.mulf %199, %197 : vector<2x128xf32>
    %201 = arith.addf %196, %200 : vector<2x128xf32>
    %c42 = arith.constant 42 : index
    %202 = memref.load %arg1[%c42] : memref<72xf32, #tpu.memory_space<smem>>
    %c44 = arith.constant 44 : index
    %203 = memref.load %arg1[%c44] : memref<72xf32, #tpu.memory_space<smem>>
    %204 = arith.addf %202, %203 : f32
    %cst_24 = arith.constant 5.000000e-01 : f32
    %205 = arith.mulf %cst_24, %204 : f32
    %206 = vector.extract_strided_slice %60 {offsets = [4, 0], sizes = [2, 128], strides = [1, 1]} : vector<8x128xf32> to vector<2x128xf32>
    %207 = vector.broadcast %205 : f32 to vector<2x128xf32>
    %208 = arith.mulf %207, %206 : vector<2x128xf32>
    %209 = arith.addf %201, %208 : vector<2x128xf32>
    %210 = vector.extract_strided_slice %57 {offsets = [6, 0], sizes = [2, 128], strides = [1, 1]} : vector<8x128xf32> to vector<2x128xf32>
    %c46 = arith.constant 46 : index
    %211 = memref.load %arg1[%c46] : memref<72xf32, #tpu.memory_space<smem>>
    %212 = vector.broadcast %211 : f32 to vector<2x128xf32>
    %213 = arith.mulf %212, %210 : vector<2x128xf32>
    %214 = arith.addf %209, %213 : vector<2x128xf32>
    %c45 = arith.constant 45 : index
    %215 = memref.load %arg1[%c45] : memref<72xf32, #tpu.memory_space<smem>>
    %c47 = arith.constant 47 : index
    %216 = memref.load %arg1[%c47] : memref<72xf32, #tpu.memory_space<smem>>
    %217 = arith.addf %215, %216 : f32
    %cst_25 = arith.constant 5.000000e-01 : f32
    %218 = arith.mulf %cst_25, %217 : f32
    %219 = vector.extract_strided_slice %60 {offsets = [6, 0], sizes = [2, 128], strides = [1, 1]} : vector<8x128xf32> to vector<2x128xf32>
    %220 = vector.broadcast %218 : f32 to vector<2x128xf32>
    %221 = arith.mulf %220, %219 : vector<2x128xf32>
    %222 = arith.addf %214, %221 : vector<2x128xf32>
    %c7_26 = arith.constant 7 : index
    %223 = memref.load %arg2[%c7_26] : memref<9xf32, #tpu.memory_space<smem>>
    %224 = vector.broadcast %223 : f32 to vector<2x128xf32>
    %225 = vector.extract_strided_slice %57 {offsets = [0, 0], sizes = [2, 128], strides = [1, 1]} : vector<8x128xf32> to vector<2x128xf32>
    %c49 = arith.constant 49 : index
    %226 = memref.load %arg1[%c49] : memref<72xf32, #tpu.memory_space<smem>>
    %227 = vector.broadcast %226 : f32 to vector<2x128xf32>
    %228 = arith.mulf %227, %225 : vector<2x128xf32>
    %229 = arith.addf %224, %228 : vector<2x128xf32>
    %c48 = arith.constant 48 : index
    %230 = memref.load %arg1[%c48] : memref<72xf32, #tpu.memory_space<smem>>
    %c50 = arith.constant 50 : index
    %231 = memref.load %arg1[%c50] : memref<72xf32, #tpu.memory_space<smem>>
    %232 = arith.addf %230, %231 : f32
    %cst_27 = arith.constant 5.000000e-01 : f32
    %233 = arith.mulf %cst_27, %232 : f32
    %234 = vector.extract_strided_slice %60 {offsets = [0, 0], sizes = [2, 128], strides = [1, 1]} : vector<8x128xf32> to vector<2x128xf32>
    %235 = vector.broadcast %233 : f32 to vector<2x128xf32>
    %236 = arith.mulf %235, %234 : vector<2x128xf32>
    %237 = arith.addf %229, %236 : vector<2x128xf32>
    %238 = vector.extract_strided_slice %57 {offsets = [2, 0], sizes = [2, 128], strides = [1, 1]} : vector<8x128xf32> to vector<2x128xf32>
    %c52 = arith.constant 52 : index
    %239 = memref.load %arg1[%c52] : memref<72xf32, #tpu.memory_space<smem>>
    %240 = vector.broadcast %239 : f32 to vector<2x128xf32>
    %241 = arith.mulf %240, %238 : vector<2x128xf32>
    %242 = arith.addf %237, %241 : vector<2x128xf32>
    %c51 = arith.constant 51 : index
    %243 = memref.load %arg1[%c51] : memref<72xf32, #tpu.memory_space<smem>>
    %c53 = arith.constant 53 : index
    %244 = memref.load %arg1[%c53] : memref<72xf32, #tpu.memory_space<smem>>
    %245 = arith.addf %243, %244 : f32
    %cst_28 = arith.constant 5.000000e-01 : f32
    %246 = arith.mulf %cst_28, %245 : f32
    %247 = vector.extract_strided_slice %60 {offsets = [2, 0], sizes = [2, 128], strides = [1, 1]} : vector<8x128xf32> to vector<2x128xf32>
    %248 = vector.broadcast %246 : f32 to vector<2x128xf32>
    %249 = arith.mulf %248, %247 : vector<2x128xf32>
    %250 = arith.addf %242, %249 : vector<2x128xf32>
    %251 = vector.extract_strided_slice %57 {offsets = [4, 0], sizes = [2, 128], strides = [1, 1]} : vector<8x128xf32> to vector<2x128xf32>
    %c55 = arith.constant 55 : index
    %252 = memref.load %arg1[%c55] : memref<72xf32, #tpu.memory_space<smem>>
    %253 = vector.broadcast %252 : f32 to vector<2x128xf32>
    %254 = arith.mulf %253, %251 : vector<2x128xf32>
    %255 = arith.addf %250, %254 : vector<2x128xf32>
    %c54 = arith.constant 54 : index
    %256 = memref.load %arg1[%c54] : memref<72xf32, #tpu.memory_space<smem>>
    %c56 = arith.constant 56 : index
    %257 = memref.load %arg1[%c56] : memref<72xf32, #tpu.memory_space<smem>>
    %258 = arith.addf %256, %257 : f32
    %cst_29 = arith.constant 5.000000e-01 : f32
    %259 = arith.mulf %cst_29, %258 : f32
    %260 = vector.extract_strided_slice %60 {offsets = [4, 0], sizes = [2, 128], strides = [1, 1]} : vector<8x128xf32> to vector<2x128xf32>
    %261 = vector.broadcast %259 : f32 to vector<2x128xf32>
    %262 = arith.mulf %261, %260 : vector<2x128xf32>
    %263 = arith.addf %255, %262 : vector<2x128xf32>
    %264 = vector.extract_strided_slice %57 {offsets = [6, 0], sizes = [2, 128], strides = [1, 1]} : vector<8x128xf32> to vector<2x128xf32>
    %c58 = arith.constant 58 : index
    %265 = memref.load %arg1[%c58] : memref<72xf32, #tpu.memory_space<smem>>
    %266 = vector.broadcast %265 : f32 to vector<2x128xf32>
    %267 = arith.mulf %266, %264 : vector<2x128xf32>
    %268 = arith.addf %263, %267 : vector<2x128xf32>
    %c57 = arith.constant 57 : index
    %269 = memref.load %arg1[%c57] : memref<72xf32, #tpu.memory_space<smem>>
    %c59 = arith.constant 59 : index
    %270 = memref.load %arg1[%c59] : memref<72xf32, #tpu.memory_space<smem>>
    %271 = arith.addf %269, %270 : f32
    %cst_30 = arith.constant 5.000000e-01 : f32
    %272 = arith.mulf %cst_30, %271 : f32
    %273 = vector.extract_strided_slice %60 {offsets = [6, 0], sizes = [2, 128], strides = [1, 1]} : vector<8x128xf32> to vector<2x128xf32>
    %274 = vector.broadcast %272 : f32 to vector<2x128xf32>
    %275 = arith.mulf %274, %273 : vector<2x128xf32>
    %276 = arith.addf %268, %275 : vector<2x128xf32>
    %277 = tpu.concatenate %114, %168, %222, %276 in 0 : vector<2x128xf32>, vector<2x128xf32>, vector<2x128xf32>, vector<2x128xf32> -> vector<8x128xf32>
    %278 = math.tanh %277 : vector<8x128xf32>
    %c1_i32_31 = arith.constant 1 : i32
    %279 = tpu.dynamic_rotate %278 by %c1_i32_31 dim 1 : vector<8x128xf32>, i32 -> vector<8x128xf32>
    %c127_i32_32 = arith.constant 127 : i32
    %280 = tpu.dynamic_rotate %278 by %c127_i32_32 dim 1 : vector<8x128xf32>, i32 -> vector<8x128xf32>
    %281 = arith.addf %279, %280 : vector<8x128xf32>
    %c8_33 = arith.constant 8 : index
    %282 = memref.load %arg2[%c8_33] : memref<9xf32, #tpu.memory_space<smem>>
    %283 = vector.broadcast %282 : f32 to vector<2x128xf32>
    %284 = vector.extract_strided_slice %278 {offsets = [0, 0], sizes = [2, 128], strides = [1, 1]} : vector<8x128xf32> to vector<2x128xf32>
    %c61 = arith.constant 61 : index
    %285 = memref.load %arg1[%c61] : memref<72xf32, #tpu.memory_space<smem>>
    %286 = vector.broadcast %285 : f32 to vector<2x128xf32>
    %287 = arith.mulf %286, %284 : vector<2x128xf32>
    %288 = arith.addf %283, %287 : vector<2x128xf32>
    %c60 = arith.constant 60 : index
    %289 = memref.load %arg1[%c60] : memref<72xf32, #tpu.memory_space<smem>>
    %c62 = arith.constant 62 : index
    %290 = memref.load %arg1[%c62] : memref<72xf32, #tpu.memory_space<smem>>
    %291 = arith.addf %289, %290 : f32
    %cst_34 = arith.constant 5.000000e-01 : f32
    %292 = arith.mulf %cst_34, %291 : f32
    %293 = vector.extract_strided_slice %281 {offsets = [0, 0], sizes = [2, 128], strides = [1, 1]} : vector<8x128xf32> to vector<2x128xf32>
    %294 = vector.broadcast %292 : f32 to vector<2x128xf32>
    %295 = arith.mulf %294, %293 : vector<2x128xf32>
    %296 = arith.addf %288, %295 : vector<2x128xf32>
    %297 = vector.extract_strided_slice %278 {offsets = [2, 0], sizes = [2, 128], strides = [1, 1]} : vector<8x128xf32> to vector<2x128xf32>
    %c64 = arith.constant 64 : index
    %298 = memref.load %arg1[%c64] : memref<72xf32, #tpu.memory_space<smem>>
    %299 = vector.broadcast %298 : f32 to vector<2x128xf32>
    %300 = arith.mulf %299, %297 : vector<2x128xf32>
    %301 = arith.addf %296, %300 : vector<2x128xf32>
    %c63 = arith.constant 63 : index
    %302 = memref.load %arg1[%c63] : memref<72xf32, #tpu.memory_space<smem>>
    %c65 = arith.constant 65 : index
    %303 = memref.load %arg1[%c65] : memref<72xf32, #tpu.memory_space<smem>>
    %304 = arith.addf %302, %303 : f32
    %cst_35 = arith.constant 5.000000e-01 : f32
    %305 = arith.mulf %cst_35, %304 : f32
    %306 = vector.extract_strided_slice %281 {offsets = [2, 0], sizes = [2, 128], strides = [1, 1]} : vector<8x128xf32> to vector<2x128xf32>
    %307 = vector.broadcast %305 : f32 to vector<2x128xf32>
    %308 = arith.mulf %307, %306 : vector<2x128xf32>
    %309 = arith.addf %301, %308 : vector<2x128xf32>
    %310 = vector.extract_strided_slice %278 {offsets = [4, 0], sizes = [2, 128], strides = [1, 1]} : vector<8x128xf32> to vector<2x128xf32>
    %c67 = arith.constant 67 : index
    %311 = memref.load %arg1[%c67] : memref<72xf32, #tpu.memory_space<smem>>
    %312 = vector.broadcast %311 : f32 to vector<2x128xf32>
    %313 = arith.mulf %312, %310 : vector<2x128xf32>
    %314 = arith.addf %309, %313 : vector<2x128xf32>
    %c66 = arith.constant 66 : index
    %315 = memref.load %arg1[%c66] : memref<72xf32, #tpu.memory_space<smem>>
    %c68 = arith.constant 68 : index
    %316 = memref.load %arg1[%c68] : memref<72xf32, #tpu.memory_space<smem>>
    %317 = arith.addf %315, %316 : f32
    %cst_36 = arith.constant 5.000000e-01 : f32
    %318 = arith.mulf %cst_36, %317 : f32
    %319 = vector.extract_strided_slice %281 {offsets = [4, 0], sizes = [2, 128], strides = [1, 1]} : vector<8x128xf32> to vector<2x128xf32>
    %320 = vector.broadcast %318 : f32 to vector<2x128xf32>
    %321 = arith.mulf %320, %319 : vector<2x128xf32>
    %322 = arith.addf %314, %321 : vector<2x128xf32>
    %323 = vector.extract_strided_slice %278 {offsets = [6, 0], sizes = [2, 128], strides = [1, 1]} : vector<8x128xf32> to vector<2x128xf32>
    %c70 = arith.constant 70 : index
    %324 = memref.load %arg1[%c70] : memref<72xf32, #tpu.memory_space<smem>>
    %325 = vector.broadcast %324 : f32 to vector<2x128xf32>
    %326 = arith.mulf %325, %323 : vector<2x128xf32>
    %327 = arith.addf %322, %326 : vector<2x128xf32>
    %c69 = arith.constant 69 : index
    %328 = memref.load %arg1[%c69] : memref<72xf32, #tpu.memory_space<smem>>
    %c71 = arith.constant 71 : index
    %329 = memref.load %arg1[%c71] : memref<72xf32, #tpu.memory_space<smem>>
    %330 = arith.addf %328, %329 : f32
    %cst_37 = arith.constant 5.000000e-01 : f32
    %331 = arith.mulf %cst_37, %330 : f32
    %332 = vector.extract_strided_slice %281 {offsets = [6, 0], sizes = [2, 128], strides = [1, 1]} : vector<8x128xf32> to vector<2x128xf32>
    %333 = vector.broadcast %331 : f32 to vector<2x128xf32>
    %334 = arith.mulf %333, %332 : vector<2x128xf32>
    %335 = arith.addf %327, %334 : vector<2x128xf32>
    %c0_38 = arith.constant 0 : index
    %c0_39 = arith.constant 0 : index
    %336 = vector.load %arg4[%c0_38, %c0_39] : memref<2x128xf32, #tpu.memory_space<vmem>>, vector<2x128xf32>
    tpu.vector_store %arg4[%c0_38, %c0_39], %335 {strides = array<i32>} : memref<2x128xf32, #tpu.memory_space<vmem>>, vector<2x128xf32>,
    return
  }
  func.func @transform_0(%arg0: i32) -> i32 {
    %c0_i32 = arith.constant 0 : i32
    %c0_i32_0 = arith.constant 0 : i32
    return %c0_i32 : i32
  }
  func.func @transform_1(%arg0: i32) -> i32 {
    %c0_i32 = arith.constant 0 : i32
    %c0_i32_0 = arith.constant 0 : i32
    return %c0_i32 : i32
  }
  func.func @transform_2(%arg0: i32) -> (i32, i32) {
    %c0_i32 = arith.constant 0 : i32
    %c0_i32_0 = arith.constant 0 : i32
    return %arg0, %c0_i32 : i32, i32
  }
  func.func @transform_3(%arg0: i32) -> (i32, i32) {
    %c0_i32 = arith.constant 0 : i32
    %c0_i32_0 = arith.constant 0 : i32
    return %arg0, %c0_i32 : i32, i32
  }
}

</mosaic_0001>

<bundles_post_ra>
// kernel: _convmodel_forward_impl.1
= control target key start
LH: loop header
LB: loop body
LE: loop exit
PB: predicated region body
PF: predicated region fallthrough
CT: control target
= control target key end

     0   :  { %s922_s0 = inlined_call_operand.vmem [shape: f32[72], index: 0, kind: input, shape index: {}]   ;;  %s923_s1 = inlined_call_operand.vmem [shape: f32[9], index: 1, kind: input, shape index: {}]   ;;  %s924_s2 = inlined_call_operand.vmem [shape: f32[2,128], index: 2, kind: input, shape index: {}]   ;;  %s925_s3 = inlined_call_operand.hbm [shape: f32[2,128], index: 3, kind: output, shape index: {}]  }
   0x1   :  { %930 = sst [smem:[#allocation28_spill]] %s925_s3 }
   0x2   :  { %8 = vsyncpa [#allocation4], 0 }
   0x3   :  { %9 = vsyncpa [#allocation6], 0 }
   0x4   :  { %10 = vsyncpa [#allocation3], 0  ;;  %s17_s14 = sshll.u32 %s922_s0, 4  ;;  %s27_s17 = sshll.u32 %s923_s1, 4  ;;  %s18_s14 = int_to_ptr.vmem [resolvable:$true] %s17_s14  ;;  %s28_s17 = int_to_ptr.vmem [resolvable:$true] %s27_s17 }
   0x5   :  { %s562_s18 = scalar_lea.vmem %s18_s14, 16  ;;  %p567_p1 = scmp.lt.s32.totalorder %s18_s14, %s18_s14 }
   0x6   :  { %p563_p0 = scmp.ne.s32.totalorder %s18_s14, %s562_s18  ;;  %p568_p2 = scmp.lt.s32.totalorder %s562_s18, %s562_s18 }
   0x8   :  { %p569_p3 = por %p568_p2, %p567_p1 }
   0xa   :  { %p570_p4 = pnand %p569_p3, %p563_p0 }
   0xc   :  { %573 = shalt.err (!%p570_p4)
}
   0xd   :  { %s614_s19 = smov [#allocation2]   ;;  %s574_s20 = scalar_lea.vmem %s28_s17, 16 }
   0xe   :  { %20 = dma.vmem_to_smem %s18_s14, 16, %s614_s19, [#allocation4]  }
   0xf   :  { %p575_p5 = scmp.ne.s32.totalorder %s28_s17, %s574_s20  ;;  %p579_p6 = scmp.lt.s32.totalorder %s28_s17, %s28_s17 }
  0x10   :  { %p580_p7 = scmp.lt.s32.totalorder %s574_s20, %s574_s20 }
  0x12   :  { %p581_p8 = por %p580_p7, %p579_p6 }
  0x14   :  { %p582_p9 = pnand %p581_p8, %p575_p5 }
  0x16   :  { %585 = shalt.err (!%p582_p9)
}
  0x17   :  { %s615_s0 = smov [#allocation5]  }
  0x18   :  { %30 = dma.vmem_to_smem %s28_s17, 16, %s615_s0, [#allocation6]  }
  0x19   :  { %608 = dma.done.wait [#allocation4], 16  }
  0x1a   :  { %609 = vsyncadd [#allocation4], 4294967280 }
  0x1b   :  { %610 = dma.done.wait [#allocation6], 16  }
  0x1c   :  { %611 = vsyncadd [#allocation6], 4294967280 }
  0x1d   :  { %39 = sfence }
  0x1e   :  { %v40_v0 = vld [vmem:[%s924_s2] sm:$0x3]  ;;  %s926_s22 = smov 1   ;;  %s927_s23 = smov 127   ;;  %vm107_vm0 = vcmask 1041408   ;;  %vm109_vm1 = vcmask 1043456  }
  0x1f   :  { %41 = vrot.lane.b32.xlu0 %v40_v0, %s926_s22  ;;  %s52_s24 = sld [smem:[#allocation2]]  ;;  %s475_s25 = sld [smem:[#allocation2 + $0x2]]  ;;  %vm111_vm2 = vcmask 1045504  }
  0x20   :  { %s478_s26 = sld [smem:[#allocation2 + $0x3]]  ;;  %s479_s27 = sld [smem:[#allocation2 + $0x5]] }
  0x21   :  { %s482_s28 = sld [smem:[#allocation2 + $0x6]]  ;;  %s483_s29 = sld [smem:[#allocation2 + $0x8]] }
  0x22   :  { %s486_s30 = sld [smem:[#allocation2 + $0x9]]  ;;  %s487_s4 = sld [smem:[#allocation2 + $0xb]] }
  0x23   :  { %43 = vrot.lane.b32.xlu0 %v40_v0, %s927_s23  ;;  %s477_s5 = sld [smem:[#allocation2 + $0x4]]  ;;  %s481_s6 = sld [smem:[#allocation2 + $0x7]] }
  0x24   :  { %s485_s7 = sld [smem:[#allocation2 + $0xa]]  ;;  %s474_s8 = sld [smem:[#allocation2 + $0x1]] }
  0x25   :  { %s650_s9 = sld [smem:[#allocation5 + $0x1]]  ;;  %s54_s2 = sadd.f32 %s475_s25, %s52_s24 }
  0x26   :  { %s480_s10 = sld [smem:[#allocation5 + $0x2]]  ;;  %s67_s11 = sadd.f32 %s479_s27, %s478_s26 }
  0x27   :  { %s484_s12 = sld [smem:[#allocation5 + $0x3]]  ;;  %s46_s13 = sld [smem:[#allocation5]] }
  0x28   :  { %s80_s14 = sadd.f32 %s483_s29, %s482_s28  ;;  %s55_s16 = smul.f32 0.5, %s54_s2 }
  0x29   :  { %s93_s15 = sadd.f32 %s487_s4, %s486_s30  ;;  %v62_v1 = vstv %s477_s5  ;;  %s68_s17 = smul.f32 0.5, %s67_s11  ;;  %v75_v2 = vstv %s481_s6 }
  0x2a   :  { %v88_v3 = vstv %s485_s7  ;;  %v49_v4 = vstv %s474_s8  ;;  %s81_s18 = smul.f32 0.5, %s80_s14  ;;  %v63_v6 = vmul.f32 %v62_v1, %v40_v0  ;;  %v76_v7 = vmul.f32 %v75_v2, %v40_v0  ;;  %s662_s20 = sld [smem:[#allocation5 + $0x4]] }
  0x2b   :  { %s94_s19 = smul.f32 0.5, %s93_s15  ;;  %v89_v8 = vmul.f32 %v88_v3, %v40_v0  ;;  %v60_v9 = vstv %s650_s9  ;;  %v50_v12 = vmul.f32 %v49_v4, %v40_v0  ;;  %v56_v14 = vstv %s55_s16  ;;  %s664_s0 = sld [smem:[#allocation2 + $0xd]] }
  0x2c   :  { %v73_v10 = vstv %s480_s10  ;;  %v69_v15 = vstv %s68_s17  ;;  %v82_v16 = vstv %s81_s18  ;;  %v64_v20 = vadd.f32 %v63_v6, %v60_v9  ;;  %s666_s1 = sld [smem:[#allocation2 + $0x10]]  ;;  %s668_s21 = sld [smem:[#allocation2 + $0x13]] }
  0x2d   :  { %v86_v11 = vstv %s484_s12  ;;  %v47_v13 = vstv %s46_s13  ;;  %v95_v17 = vstv %s94_s19  ;;  %v77_v21 = vadd.f32 %v76_v7, %v73_v10  ;;  %s670_s24 = sld [smem:[#allocation2 + $0x16]]  ;;  %s672_s25 = sld [smem:[#allocation5 + $0x5]] }
  0x2e   :  { %v90_v22 = vadd.f32 %v89_v8, %v86_v11  ;;  %v51_v23 = vadd.f32 %v50_v12, %v47_v13  ;;  %s674_s26 = sld [smem:[#allocation2 + $0x19]]  ;;  %s676_s27 = sld [smem:[#allocation2 + $0x1c]] }
  0x2f   :  { %s678_s28 = sld [smem:[#allocation2 + $0x1f]]  ;;  %s490_s29 = sld [smem:[#allocation2 + $0xc]] }
  0x30   :  { %s491_s30 = sld [smem:[#allocation2 + $0xe]]  ;;  %s680_s4 = sld [smem:[#allocation2 + $0x22]]  ;;  %v120_v39 = vstv %s662_s20 }
  0x31   :  { %s682_s5 = sld [smem:[#allocation5 + $0x6]]  ;;  %s493_s6 = sld [smem:[#allocation2 + $0xf]]  ;;  %v122_v40 = vstv %s664_s0 }
  0x32   :  { %s494_s7 = sld [smem:[#allocation2 + $0x11]]  ;;  %s684_s8 = sld [smem:[#allocation2 + $0x25]]  ;;  %v133_v41 = vstv %s666_s1  ;;  %v150_v42 = vstv %s668_s21 }
  0x33   :  { %s686_s9 = sld [smem:[#allocation2 + $0x28]]  ;;  %s496_s2 = sld [smem:[#allocation2 + $0x12]]  ;;  %v167_v43 = vstv %s670_s24  ;;  %v184_v44 = vstv %s672_s25 }
  0x34   :  { %s497_s10 = sld [smem:[#allocation2 + $0x14]]  ;;  %s499_s11 = sld [smem:[#allocation2 + $0x15]]  ;;  %v186_v45 = vstv %s674_s26  ;;  %v197_v46 = vstv %s676_s27 }
  0x35   :  { %s500_s12 = sld [smem:[#allocation2 + $0x17]]  ;;  %s503_s13 = sld [smem:[#allocation2 + $0x18]]  ;;  %v214_v47 = vstv %s678_s28 }
  0x36   :  { %s504_s14 = sld [smem:[#allocation2 + $0x1a]]  ;;  %s688_s15 = sld [smem:[#allocation2 + $0x2b]]  ;;  %v231_v48 = vstv %s680_s4 }
  0x37   :  { %931 = sst [smem:[#allocation11_spill]] %s682_s5  ;;  %s690_s16 = sld [smem:[#allocation2 + $0x2e]] }
  0x38   :  { %932 = sst [smem:[#allocation12_spill]] %s684_s8  ;;  %s692_s18 = sld [smem:[#allocation5 + $0x7]] }
  0x39   :  { %933 = sst [smem:[#allocation13_spill]] %s686_s9  ;;  %s694_s19 = sld [smem:[#allocation2 + $0x1b]] }
  0x3a   :  { %s127_s17 = sadd.f32 %s491_s30, %s490_s29  ;;  %s698_s3 = sld [smem:[#allocation2 + $0x1d]] }
  0x3b   :  { %s700_s9 = sld [smem:[#allocation2 + $0x1e]]  ;;  %s702_s8 = sld [smem:[#allocation2 + $0x34]] }
  0x3c   :  { %934 = sst [smem:[#allocation14_spill]] %s688_s15  ;;  %s704_s5 = smul.f32 0.5, %s127_s17 }
  0x3d   :  { %935 = sst [smem:[#allocation15_spill]] %s690_s16  ;;  %s706_s29 = sld [smem:[#allocation2 + $0x20]] }
  0x3e   :  { %936 = sst [smem:[#allocation16_spill]] %s692_s18  ;;  %s764_s1 = sld [smem:[#allocation2 + $0x38]]  ;;  %v129_v60 = vstv %s704_s5 }
  0x3f   :  { %s158_s15 = sadd.f32 %s497_s10, %s496_s2  ;;  %s720_s2 = sld [smem:[#allocation2 + $0x3a]] }
  0x40   :  { %s175_s16 = sadd.f32 %s500_s12, %s499_s11  ;;  %s726_s11 = sld [smem:[#allocation2 + $0x24]] }
  0x41   :  { %938 = sst [smem:[#allocation18_spill]] %s702_s8  ;;  %s714_s18 = smul.f32 0.5, %s158_s15 }
  0x42   :  { %s716_s8 = sld [smem:[#allocation2 + $0x37]]  ;;  %s718_s17 = smul.f32 0.5, %s175_s16 }
  0x43   :  { %940 = sst [smem:[#allocation20_spill]] %s714_s18  ;;  %s728_s12 = sld [smem:[#allocation2 + $0x26]] }
  0x44   :  { %941 = sst [smem:[#allocation21_spill]] %s718_s17  ;;  %s746_s17 = sld [smem:[#allocation2 + $0x30]] }
  0x45   :  { %s222_s15 = sadd.f32 %s706_s29, %s700_s9  ;;  %s736_s16 = sld [smem:[#allocation2 + $0x2a]]  ;;  %v359_v58 = vstv %s720_s2 }
  0x46   :  { %s748_s18 = sld [smem:[#allocation2 + $0x32]]  ;;  %s949_s9 = sld [smem:[#allocation12_spill]] }
  0x47   :  { %s950_s29 = sld [smem:[#allocation13_spill]]  ;;  %s956_s0 = sld [smem:[#allocation18_spill]] }
  0x48   :  { %958 = sst [smem:[#allocation13_spill]] %s764_s1  ;;  %s774_s26 = smul.f32 0.5, %s222_s15  ;;  %v342_v57 = vstv %s716_s8 }
  0x49   :  { %s255_s25 = sadd.f32 %s728_s12, %s726_s11  ;;  %s962_s1 = sld [smem:[#allocation21_spill]] }
  0x4a   :  { %946 = sst [smem:[#allocation26_spill]] %s746_s17  ;;  %s953_s17 = sld [smem:[#allocation15_spill]]  ;;  %v224_v9 = vstv %s774_s26 }
  0x4b   :  { %s788_s11 = sld [smem:[#allocation2 + $0x3b]]  ;;  %s966_s12 = sld [smem:[#allocation26_spill]] }
  0x4c   :  { %947 = sst [smem:[#allocation27_spill]] %s748_s18  ;;  %s954_s18 = sld [smem:[#allocation16_spill]]  ;;  %v250_v50 = vstv %s949_s9 }
  0x4d   :  { %v261_v51 = vstv %s950_s29  ;;  %v325_v56 = vstv %s956_s0  ;;  %s819_s9 = smul.f32 0.5, %s255_s25  ;;  %s972_s2 = smov 127  }
  0x4e   :  { %s542_s25 = sld [smem:[#allocation2 + $0x3c]]  ;;  %s543_s26 = sld [smem:[#allocation2 + $0x3e]] }
  0x4f   :  { %v177_v2 = vstv %s962_s1  ;;  %s973_s1 = smov 1  }
  0x50   :  { %v295_v53 = vstv %s953_s17  ;;  %s967_s17 = sld [smem:[#allocation27_spill]] }
  0x52   :  { %v312_v54 = vstv %s954_s18 }
  0x56   :  { %s319_s29 = sadd.f32 %s967_s17, %s966_s12  ;;  %s544_s12 = sld [smem:[#allocation2 + $0x40]] }
  0x57   :  { %s401_s17 = sadd.f32 %s543_s26, %s542_s25 }
  0x91   :  { %v42_v5 = vpop.permute.xlu0 %41 }
  0x95   :  { %v44_v18 = vpop.permute.xlu0 %43 }
  0x96   :  { %v45_v19 = vadd.f32 %v44_v18, %v42_v5 }
  0x98   :  { %v57_v24 = vmul.f32 %v56_v14, %v45_v19  ;;  %v70_v25 = vmul.f32 %v69_v15, %v45_v19  ;;  %v83_v26 = vmul.f32 %v82_v16, %v45_v19  ;;  %v96_v27 = vmul.f32 %v95_v17, %v45_v19 }
  0x9a   :  { %v71_v28 = vadd.f32 %v70_v25, %v64_v20  ;;  %v84_v29 = vadd.f32 %v83_v26, %v77_v21  ;;  %v97_v30 = vadd.f32 %v96_v27, %v90_v22  ;;  %v58_v31 = vadd.f32 %v57_v24, %v51_v23 }
  0x9c   :  { %v99_v32 = vrot.slane %v71_v28, 6  ;;  %v102_v33 = vrot.slane %v84_v29, 4  ;;  %v105_v34 = vrot.slane %v97_v30, 2  ;;  %v257_v29 = vstv %s819_s9  ;;  %s550_s9 = sld [smem:[#allocation2 + $0x46]] }
  0x9e   :  { %v108_v35 = vsel %vm107_vm0, %v58_v31, %v99_v32 }
  0x9f   :  { %v110_v36 = vsel %vm109_vm1, %v108_v35, %v102_v33 }
  0xa0   :  { %v112_v37 = vsel %vm111_vm2, %v110_v36, %v105_v34 }
  0xa1   :  { %558 = vtanh.f32 %v112_v37 }
  0xab   :  { %v656_v38 = vpop.eup %558 }
  0xac   :  { %114 = vrot.lane.b32.xlu1 %v656_v38, %s926_s22  ;;  %s696_s22 = sld [smem:[#allocation2 + $0x31]]  ;;  %v123_v59 = vmul.f32 %v656_v38, %v122_v40  ;;  %v797_v63 = vmul.f32 %v656_v38, %v133_v41  ;;  %v800_v0 = vmul.f32 %v656_v38, %v150_v42  ;;  %v803_v1 = vmul.f32 %v656_v38, %v167_v43 }
  0xad   :  { %v187_v4 = vmul.f32 %v656_v38, %v186_v45  ;;  %v198_v6 = vmul.f32 %v656_v38, %v197_v46  ;;  %v817_v7 = vmul.f32 %v656_v38, %v214_v47  ;;  %v826_v10 = vmul.f32 %v656_v38, %v231_v48 }
  0xae   :  { %v251_v11 = vmul.f32 %v656_v38, %v250_v50  ;;  %v124_v12 = vadd.f32 %v123_v59, %v120_v39  ;;  %v262_v13 = vmul.f32 %v656_v38, %v261_v51  ;;  %v136_v16 = vrot.slane %v797_v63, 2 }
  0xaf   :  { %v153_v17 = vrot.slane %v800_v0, 4  ;;  %v170_v18 = vrot.slane %v803_v1, 6  ;;  %v326_v19 = vmul.f32 %v656_v38, %v325_v56  ;;  %v188_v21 = vadd.f32 %v187_v4, %v184_v44 }
  0xb0   :  { %116 = vrot.lane.b32.xlu1 %v656_v38, %s927_s23  ;;  %s141_s23 = sadd.f32 %s494_s7, %s493_s6  ;;  %s710_s6 = sld [smem:[#allocation2 + $0x21]]  ;;  %v200_v22 = vrot.slane %v198_v6, 2  ;;  %v217_v23 = vrot.slane %v817_v7, 4  ;;  %v853_v24 = vmul.f32 %v656_v38, %v295_v53  ;;  %v234_v26 = vrot.slane %v826_v10, 6 }
  0xb1   :  { %s712_s7 = sld [smem:[#allocation2 + $0x23]]  ;;  %v264_v30 = vrot.slane %v262_v13, 2  ;;  %v328_v35 = vrot.slane %v326_v19, 2  ;;  %v343_v36 = vmul.f32 %v656_v38, %v342_v57  ;;  %v360_v19 = vmul.f32 %v656_v38, %v359_v58 }
  0xb2   :  { %937 = sst [smem:[#allocation17_spill]] %s696_s22  ;;  %s708_s30 = smul.f32 0.5, %s141_s23 }
  0xb3   :  { %s191_s22 = sadd.f32 %s504_s14, %s503_s13  ;;  %s730_s13 = sld [smem:[#allocation2 + $0x27]] }
  0xb4   :  { %939 = sst [smem:[#allocation19_spill]] %s708_s30  ;;  %s732_s14 = sld [smem:[#allocation2 + $0x29]] }
  0xb5   :  { %s722_s10 = smul.f32 0.5, %s191_s22  ;;  %s205_s23 = sadd.f32 %s698_s3, %s694_s19 }
  0xb6   :  { %s738_s22 = sld [smem:[#allocation2 + $0x2c]]  ;;  %s744_s19 = sld [smem:[#allocation2 + $0x2f]] }
  0xb7   :  { %942 = sst [smem:[#allocation22_spill]] %s722_s10  ;;  %s740_s10 = sld [smem:[#allocation2 + $0x2d]] }
  0xb8   :  { %s948_s30 = sld [smem:[#allocation11_spill]]  ;;  %s756_s3 = sld [smem:[#allocation2 + $0x35]] }
  0xb9   :  { %s955_s20 = sld [smem:[#allocation17_spill]]  ;;  %s766_s21 = smul.f32 0.5, %s205_s23 }
  0xba   :  { %s959_s24 = sld [smem:[#allocation19_spill]]  ;;  %s786_s23 = sld [smem:[#allocation2 + $0x39]] }
  0xbb   :  { %s969_s8 = sadd.f32 %s712_s7, %s710_s6  ;;  %v207_v8 = vstv %s766_s21 }
  0xbc   :  { %943 = sst [smem:[#allocation23_spill]] %s738_s22  ;;  %s754_s22 = sld [smem:[#allocation2 + $0x33]] }
  0xbd   :  { %944 = sst [smem:[#allocation24_spill]] %s740_s10  ;;  %s762_s10 = sld [smem:[#allocation2 + $0x36]] }
  0xbe   :  { %945 = sst [smem:[#allocation25_spill]] %s744_s19  ;;  %s952_s19 = sld [smem:[#allocation14_spill]]  ;;  %v248_v49 = vstv %s948_s30 }
  0xbf   :  { %951 = sst [smem:[#allocation11_spill]] %s756_s3  ;;  %s960_s3 = sld [smem:[#allocation20_spill]]  ;;  %v314_v55 = vstv %s955_s20  ;;  %v252_v28 = vadd.f32 %v251_v11, %v248_v49 }
  0xc0   :  { %s961_s27 = sld [smem:[#allocation23_spill]]  ;;  %s963_s28 = sld [smem:[#allocation24_spill]]  ;;  %v143_v61 = vstv %s959_s24  ;;  %v315_v15 = vmul.f32 %v656_v38, %v314_v55 }
  0xc1   :  { %s964_s4 = sld [smem:[#allocation25_spill]]  ;;  %s965_s30 = sld [smem:[#allocation22_spill]] }
  0xc2   :  { %s968_s5 = sld [smem:[#allocation11_spill]]  ;;  %s809_s15 = smul.f32 0.5, %s969_s8  ;;  %v316_v32 = vadd.f32 %v315_v15, %v312_v54 }
  0xc3   :  { %957 = sst [smem:[#allocation12_spill]] %s762_s10  ;;  %s552_s8 = sld [smem:[#allocation2 + $0x47]] }
  0xc4   :  { %s269_s10 = sadd.f32 %s732_s14, %s730_s13  ;;  %v278_v52 = vstv %s952_s19  ;;  %s971_s19 = sld [smem:[#allocation13_spill]]  ;;  %v241_v27 = vstv %s809_s15 }
  0xc5   :  { %v160_v62 = vstv %s960_s3  ;;  %v838_v14 = vmul.f32 %v656_v38, %v278_v52  ;;  %s855_s13 = smul.f32 0.5, %s319_s29  ;;  %s547_s15 = sld [smem:[#allocation2 + $0x43]] }
  0xc6   :  { %s286_s18 = sadd.f32 %s961_s27, %s736_s16  ;;  %s970_s16 = sld [smem:[#allocation12_spill]] }
  0xc7   :  { %s303_s3 = sadd.f32 %s964_s4, %s963_s28  ;;  %v193_v5 = vstv %s965_s30  ;;  %s832_s6 = smul.f32 0.5, %s269_s10  ;;  %v281_v31 = vrot.slane %v838_v14, 4  ;;  %v321_v44 = vstv %s855_s13 }
  0xc8   :  { %s333_s7 = sadd.f32 %s968_s5, %s754_s22  ;;  %s840_s20 = smul.f32 0.5, %s286_s18 }
  0xc9   :  { %s848_s10 = smul.f32 0.5, %s303_s3  ;;  %s367_s22 = sadd.f32 %s788_s11, %s786_s23  ;;  %v271_v40 = vstv %s832_s6 }
  0xca   :  { %s861_s14 = smul.f32 0.5, %s333_s7  ;;  %v288_v41 = vstv %s840_s20  ;;  %s545_s27 = sld [smem:[#allocation2 + $0x3f]] }
  0xcb   :  { %v305_v43 = vstv %s848_s10  ;;  %s879_s24 = smul.f32 0.5, %s367_s22  ;;  %s546_s28 = sld [smem:[#allocation2 + $0x41]] }
  0xcc   :  { %s350_s0 = sadd.f32 %s971_s19, %s970_s16  ;;  %v335_v45 = vstv %s861_s14  ;;  %s541_s4 = sld [smem:[#allocation2 + $0x3d]] }
  0xcd   :  { %s548_s30 = sld [smem:[#allocation2 + $0x42]]  ;;  %s549_s23 = sld [smem:[#allocation2 + $0x44]] }
  0xce   :  { %s867_s21 = smul.f32 0.5, %s350_s0  ;;  %s540_s11 = sld [smem:[#allocation5 + $0x8]] }
  0xcf   :  { %s551_s18 = sld [smem:[#allocation2 + $0x45]]  ;;  %s402_s3 = smul.f32 0.5, %s401_s17 }
  0xd0   :  { %v352_v49 = vstv %s867_s21  ;;  %s618_s20 = smov [#allocation7]  }
  0xd1   :  { %s415_s5 = sadd.f32 %s546_s28, %s545_s27  ;;  %s464_s0 = sshll.u32 %s618_s20, 4  ;;  %s465_s0 = int_to_ptr.vmem [resolvable:$true] %s464_s0 }
  0xd2   :  { %s586_s10 = scalar_lea.vmem %s465_s0, 32  ;;  %p591_p11 = scmp.lt.s32.totalorder %s465_s0, %s465_s0 }
  0xd3   :  { %s416_s16 = smul.f32 0.5, %s415_s5  ;;  %s432_s19 = sadd.f32 %s549_s23, %s548_s30 }
  0xd4   :  { %p587_p10 = scmp.ne.s32.totalorder %s465_s0, %s586_s10  ;;  %p592_p12 = scmp.lt.s32.totalorder %s586_s10, %s586_s10 }
  0xd5   :  { %s433_s29 = smul.f32 0.5, %s432_s19  ;;  %s449_s6 = sadd.f32 %s552_s8, %s551_s18 }
  0xd6   :  { %p593_p13 = por %p592_p12, %p591_p11 }
  0xd7   :  { %s450_s7 = smul.f32 0.5, %s449_s6 }
  0xd8   :  { %p594_p0 = pnand %p593_p13, %p587_p10 }
 0x11e   :  { %v115_v3 = vpop.permute.xlu1 %114 }
 0x122   :  { %v117_v20 = vpop.permute.xlu1 %116 }
 0x123   :  { %v857_v25 = vadd.f32 %v117_v20, %v115_v3 }
 0x125   :  { %v130_v33 = vmul.f32 %v129_v60, %v857_v25  ;;  %v144_v34 = vmul.f32 %v143_v61, %v857_v25  ;;  %v194_v37 = vmul.f32 %v193_v5, %v857_v25  ;;  %v208_v39 = vmul.f32 %v207_v8, %v857_v25 }
 0x126   :  { %v161_v46 = vmul.f32 %v160_v62, %v857_v25  ;;  %v225_v48 = vmul.f32 %v224_v9, %v857_v25  ;;  %v258_v52 = vmul.f32 %v257_v29, %v857_v25  ;;  %v272_v53 = vmul.f32 %v271_v40, %v857_v25 }
 0x127   :  { %v131_v42 = vadd.f32 %v130_v33, %v124_v12  ;;  %v195_v47 = vadd.f32 %v194_v37, %v188_v21  ;;  %v146_v51 = vrot.slane %v144_v34, 2  ;;  %v210_v55 = vrot.slane %v208_v39, 2 }
 0x128   :  { %v322_v56 = vmul.f32 %v321_v44, %v857_v25  ;;  %v336_v57 = vmul.f32 %v335_v45, %v857_v25  ;;  %v242_v60 = vmul.f32 %v241_v27, %v857_v25  ;;  %v259_v61 = vadd.f32 %v258_v52, %v252_v28 }
 0x129   :  { %v138_v50 = vadd.f32 %v136_v16, %v131_v42  ;;  %v202_v54 = vadd.f32 %v200_v22, %v195_v47  ;;  %v369_v62 = vstv %s879_s24  ;;  %v163_v63 = vrot.slane %v161_v46, 4 }
 0x12a   :  { %v227_v3 = vrot.slane %v225_v48, 4  ;;  %v323_v4 = vadd.f32 %v322_v56, %v316_v32  ;;  %v266_v6 = vadd.f32 %v264_v30, %v259_v61  ;;  %v274_v7 = vrot.slane %v272_v53, 2 }
 0x12b   :  { %v148_v59 = vadd.f32 %v146_v51, %v138_v50  ;;  %v212_v0 = vadd.f32 %v210_v55, %v202_v54  ;;  %v289_v8 = vmul.f32 %v288_v41, %v857_v25  ;;  %v338_v12 = vrot.slane %v336_v57, 2 }
 0x12c   :  { %v330_v11 = vadd.f32 %v328_v35, %v323_v4  ;;  %v353_v13 = vmul.f32 %v352_v49, %v857_v25  ;;  %v276_v15 = vadd.f32 %v274_v7, %v266_v6  ;;  %v345_v16 = vrot.slane %v343_v36, 4 }
 0x12d   :  { %v155_v5 = vadd.f32 %v153_v17, %v148_v59  ;;  %v219_v9 = vadd.f32 %v217_v23, %v212_v0  ;;  %v178_v20 = vmul.f32 %v177_v2, %v857_v25  ;;  %v244_v17 = vrot.slane %v242_v60, 6 }
 0x12e   :  { %v340_v22 = vadd.f32 %v338_v12, %v330_v11  ;;  %v283_v27 = vadd.f32 %v281_v31, %v276_v15  ;;  %v291_v28 = vrot.slane %v289_v8, 4  ;;  %v306_v23 = vmul.f32 %v305_v43, %v857_v25 }
 0x12f   :  { %v165_v14 = vadd.f32 %v163_v63, %v155_v5  ;;  %v229_v21 = vadd.f32 %v227_v3, %v219_v9  ;;  %v370_v29 = vmul.f32 %v369_v62, %v857_v25  ;;  %v355_v38 = vrot.slane %v353_v13, 4 }
 0x130   :  { %v347_v33 = vadd.f32 %v345_v16, %v340_v22  ;;  %v293_v58 = vadd.f32 %v291_v28, %v283_v27  ;;  %v298_v2 = vrot.slane %v853_v24, 6  ;;  %v180_v34 = vrot.slane %v178_v20, 6 }
 0x131   :  { %v172_v30 = vadd.f32 %v170_v18, %v165_v14  ;;  %v236_v32 = vadd.f32 %v234_v26, %v229_v21  ;;  %v362_v31 = vrot.slane %v360_v19, 6  ;;  %v308_v39 = vrot.slane %v306_v23, 6 }
 0x132   :  { %v357_v36 = vadd.f32 %v355_v38, %v347_v33  ;;  %v300_v37 = vadd.f32 %v298_v2, %v293_v58  ;;  %v372_v25 = vrot.slane %v370_v29, 6  ;;  %v396_v46 = vstv %s541_s4 }
 0x133   :  { %v246_v35 = vadd.f32 %v244_v17, %v236_v32  ;;  %v182_v40 = vadd.f32 %v180_v34, %v172_v30  ;;  %v407_v47 = vstv %s544_s12  ;;  %v394_v50 = vstv %s540_s11 }
 0x134   :  { %v364_v41 = vadd.f32 %v362_v31, %v357_v36  ;;  %v310_v1 = vadd.f32 %v308_v39, %v300_v37  ;;  %v403_v51 = vstv %s402_s3  ;;  %v417_v52 = vstv %s416_s16 }
 0x135   :  { %v376_v42 = vrot.slane %v246_v35, 6  ;;  %v424_v56 = vstv %s547_s15  ;;  %v434_v61 = vstv %s433_s29  ;;  %v441_v3 = vstv %s550_s9 }
 0x136   :  { %v374_v18 = vadd.f32 %v372_v25, %v364_v41  ;;  %v379_v26 = vrot.slane %v310_v1, 4  ;;  %v451_v7 = vstv %s450_s7 }
 0x137   :  { %v384_v10 = vsel %vm107_vm0, %v182_v40, %v376_v42 }
 0x138   :  { %v382_v43 = vrot.slane %v374_v18, 2  ;;  %v385_v44 = vsel %vm109_vm1, %v384_v10, %v379_v26 }
 0x13a   :  { %v386_v24 = vsel %vm111_vm2, %v385_v44, %v382_v43 }
 0x13b   :  { %560 = vtanh.f32 %v386_v24 }
 0x145   :  { %v561_v45 = vpop.eup %560 }
 0x146   :  { %390 = vrot.lane.b32.xlu1 %v561_v45, %s972_s2  ;;  %388 = vrot.lane.b32.xlu0 %v561_v45, %s973_s1  ;;  %v397_v48 = vmul.f32 %v561_v45, %v396_v46  ;;  %v408_v55 = vmul.f32 %v561_v45, %v407_v47  ;;  %v425_v0 = vmul.f32 %v561_v45, %v424_v56 }
 0x147   :  { %v442_v11 = vmul.f32 %v561_v45, %v441_v3 }
 0x148   :  { %v398_v57 = vadd.f32 %v397_v48, %v394_v50  ;;  %v410_v63 = vrot.slane %v408_v55, 2  ;;  %v427_v9 = vrot.slane %v425_v0, 4 }
 0x149   :  { %v444_v16 = vrot.slane %v442_v11, 6 }
 0x1b8   :  { %v391_v49 = vpop.permute.xlu1 %390  ;;  %v389_v53 = vpop.permute.xlu0 %388 }
 0x1b9   :  { %v392_v54 = vadd.f32 %v391_v49, %v389_v53 }
 0x1bb   :  { %v404_v59 = vmul.f32 %v403_v51, %v392_v54  ;;  %v418_v60 = vmul.f32 %v417_v52, %v392_v54  ;;  %v435_v6 = vmul.f32 %v434_v61, %v392_v54  ;;  %v452_v14 = vmul.f32 %v451_v7, %v392_v54 }
 0x1bd   :  { %v405_v62 = vadd.f32 %v404_v59, %v398_v57  ;;  %v420_v4 = vrot.slane %v418_v60, 2  ;;  %v437_v13 = vrot.slane %v435_v6, 4  ;;  %v454_v20 = vrot.slane %v452_v14, 6 }
 0x1bf   :  { %v412_v5 = vadd.f32 %v410_v63, %v405_v62 }
 0x1c1   :  { %v422_v8 = vadd.f32 %v420_v4, %v412_v5 }
 0x1c3   :  { %v429_v12 = vadd.f32 %v427_v9, %v422_v8 }
 0x1c5   :  { %v439_v15 = vadd.f32 %v437_v13, %v429_v12 }
 0x1c7   :  { %v446_v19 = vadd.f32 %v444_v16, %v439_v15 }
 0x1c9   :  { %v456_v21 = vadd.f32 %v454_v20, %v446_v19 }
 0x1cb   :  { %457 = vst [vmem:[#allocation7] sm:$0x3] %v456_v21 }
 0x1cc   :  { %597 = shalt.err (!%p594_p0)
}
 0x1cd   :  { %s974_s22 = sld [smem:[#allocation28_spill]] }
 0x1d3   :  { %s598_s21 = scalar_lea.hbm %s974_s22, 32 }
 0x1d4   :  { %p599_p1 = scmp.ne.s32.totalorder %s974_s22, %s598_s21  ;;  %p602_p2 = scmp.lt.u32.totalorder %s598_s21, %s974_s22 }
 0x1d6   :  { %p604_p3 = pnand %p602_p2, %p599_p1 }
 0x1d8   :  { %607 = shalt.err (!%p604_p3)
}
 0x1d9   :  { %467 = dma.vmem_to_hbm [thread:$0]  %s465_s0, 32, %s974_s22, [#allocation3]  }
 0x1da   :  { %612 = dma.done.wait [#allocation3], 32  }
 0x1db   :  { %613 = vsyncadd [#allocation3], 4294967264 }
 0x1dc   :  { %471 = vsyncpa [#allocation3], 1 }
 0x1dd   :  { %472 = vsyncpa [#allocation4], 1 }
 0x1de   :  { %473 = vsyncpa [#allocation6], 1 }

</bundles_post_ra>
